<compile_context>
chip_gen: v7x
topology: tpu7x:2x2x1
jax: 0.10.0
libtpu: 0.0.40
codegen_flags: <defaults>
</compile_context>

<pallas_src>
import numpy as np
import jax
import jax.numpy as jnp
from jax import lax
from jax.experimental import pallas as pl
from jax.experimental.pallas import tpu as pltpu


def bin_edges(vals, num_bins):
    # TODO(synk): `Bin_edges` is not defined in the reference source; use deterministic
    # equally-spaced edges over [min, max] as a stand-in (num_bins + 1 edges).
    vmin = float(np.min(vals))
    vmax = float(np.max(vals))
    return np.linspace(vmin, vmax, num_bins + 1).astype(np.float32)


def _round_up(n, m):
    return ((n + m - 1) // m) * m


def _make_box_accuracy_kernel(xedges_in, yedges_in, bin_acc, nbins_y, strip):
    """Kernel factory: tables baked in as Python constants (closure)."""
    xedges_in = [float(v) for v in xedges_in]   # E-2 interior, de-normalized
    yedges_in = [float(v) for v in yedges_in]
    bin_acc = [float(v) for v in bin_acc]       # NB = (E-1)*(E-1) accuracies
    nb = len(bin_acc)

    def kernel(x_ref, out_ref):
        # x_ref:   (2, ts, 128) VMEM  [conf1 slab; conf2 slab], samples dense
        # out_ref: (ts, 128)    VMEM  per-sample accuracy
        ts = out_ref.shape[0]
        n_strips = ts // strip

        def do_strip(r0):
            x0 = x_ref[0, pl.ds(r0, strip), :]          # (strip, 128) f32
            x1 = x_ref[1, pl.ds(r0, strip), :]

            # np.digitize against interior edges only:
            #   sum_{k=1..E-2}(v >= e_k) == clip(np.digitize(v, e) - 1, 0, E-2)
            ix = jnp.zeros((strip, 128), dtype=jnp.int32)
            iy = jnp.zeros((strip, 128), dtype=jnp.int32)
            for xe, ye in zip(xedges_in, yedges_in):
                ix = ix + (x0 >= xe).astype(jnp.int32)
                iy = iy + (x1 >= ye).astype(jnp.int32)

            # np.ravel_multi_index([ix, iy], (E-1, E-1)) == ix * (E-1) + iy
            binnum = ix * nbins_y + iy                  # in [0, NB-1]

            # Gather bin_accuracies[binnum] via NB-1 unrolled selects (pure VPU).
            res = jnp.full((strip, 128), bin_acc[0], dtype=jnp.float32)
            for i in range(1, nb):
                res = jnp.where(binnum == i, bin_acc[i], res)
            out_ref[pl.ds(r0, strip), :] = res

        if n_strips == 1:
            do_strip(0)
        else:
            def body(s, carry):
                do_strip(pl.multiple_of(s * strip, 8))
                return carry
            lax.fori_loop(0, n_strips, body, 0)

    return kernel


class BoxAccuracy:
    """JAX/Pallas port of Box_accuracy. __init__ mirrors the torch/numpy setup."""

    def __init__(self, confidence1, confidence2, accuracy, num_bins):
        self.num_bins = num_bins
        conf = np.stack([np.asarray(confidence1, dtype=np.float32),
                         np.asarray(confidence2, dtype=np.float32)], axis=1)
        self.mean = np.mean(conf, axis=0, keepdims=True).astype(np.float32)   # (1, 2)
        std = np.std(conf, axis=0, keepdims=True).astype(np.float32)          # (1, 2)
        # Guard against a constant calibration column (std == 0 -> NaNs / degenerate
        # edges in the original); mathematically identical whenever std > 0.
        self.std = np.where(std < 1e-12, np.float32(1.0), std)
        confn = (conf - self.mean) / self.std

        nb_per_dim = int(np.sqrt(num_bins))
        self.xedges = bin_edges(confn[:, 0], nb_per_dim)   # (E,) in normalized space
        self.yedges = bin_edges(confn[:, 1], nb_per_dim)   # (E,)

        ix = np.clip(np.digitize(confn[:, 0], self.xedges) - 1, 0, len(self.xedges) - 2)
        iy = np.clip(np.digitize(confn[:, 1], self.yedges) - 1, 0, len(self.yedges) - 2)
        binnumber = np.ravel_multi_index(
            [ix, iy], (len(self.xedges) - 1, len(self.yedges) - 1))
        nb_total = (len(self.xedges) - 1) * (len(self.yedges) - 1)

        accuracy = np.asarray(accuracy, dtype=np.float32)
        self.bin_accuracies = np.array(
            [accuracy[binnumber == i].mean() if np.sum(binnumber == i) > 0 else 0.0
             for i in range(nb_total)], dtype=np.float32)                     # (NB,)

        # Fold normalization into the edges: (x-mean)/std >= e  <=>  x >= e*std + mean.
        # Keep only the E-2 interior edges (boundary edges + clips are redundant).
        xe_raw = (self.xedges * self.std[0, 0] + self.mean[0, 0]).astype(np.float32)
        ye_raw = (self.yedges * self.std[0, 1] + self.mean[0, 1]).astype(np.float32)
        self.xedges_in = [float(v) for v in xe_raw[1:-1]]
        self.yedges_in = [float(v) for v in ye_raw[1:-1]]
        self.bin_acc_list = [float(v) for v in self.bin_accuracies]
        self.nbins_y = len(self.yedges) - 1

    def forward(self, x):
        x = jnp.asarray(x, dtype=jnp.float32)                 # (N, 2)
        n = int(x.shape[0])

        # ---- tiling: samples dense on (sublane, lane); rows of 128 samples ----
        rows = max(1, -(-n // 128))
        s_min = _round_up(rows, 8)                            # rows needed, mult of 8
        if s_min <= 8:
            ts = 8                                            # tiny input: one block
        else:
            half = -(-s_min // 2)                             # aim for >= 2 grid steps
            ts = _round_up(half, 8) if half <= 64 else min(512, _round_up(half, 64))
        S = _round_up(s_min, ts)                              # total rows (mult of ts)
        npad = S * 128
        strip = 64 if ts % 64 == 0 else ts                    # in-kernel sub-strip rows

        # TODO(synk): this transpose+pad is a wrapper-side HBM copy (~16 B/sample);
        # it disappears if callers can supply x already in (2, N) layout.
        xt = jnp.zeros((2, npad), dtype=jnp.float32).at[:, :n].set(x.T)
        xt = xt.reshape(2, S, 128)                            # (2, S, 128) dense

        kernel = _make_box_accuracy_kernel(
            self.xedges_in, self.yedges_in, self.bin_acc_list, self.nbins_y, strip)

        out = pl.pallas_call(
            kernel,
            out_shape=jax.ShapeDtypeStruct((S, 128), jnp.float32),
            grid=(S // ts,),
            in_specs=[pl.BlockSpec((2, ts, 128), lambda i: (0, i, 0))],
            out_specs=pl.BlockSpec((ts, 128), lambda i: (i, 0)),
            compiler_params=pltpu.CompilerParams(
                dimension_semantics=("parallel",),
                vmem_limit_bytes=32 * 1024 * 1024,
            ),
        )(xt)
        return out.reshape(-1)[:n]                            # (N,)

    # numpy reference identical in semantics to the torch module's forward
    def forward_reference(self, x):
        x = np.asarray(x, dtype=np.float32)
        xn = (x - self.mean) / self.std
        ix = np.clip(np.digitize(xn[:, 0], self.xedges) - 1, 0, len(self.xedges) - 2)
        iy = np.clip(np.digitize(xn[:, 1], self.yedges) - 1, 0, len(self.yedges) - 2)
        binnumber = np.ravel_multi_index(
            [ix, iy], (len(self.xedges) - 1, len(self.yedges) - 1))
        return self.bin_accuracies[binnumber]


if __name__ == "__main__":
    key = jax.random.PRNGKey(0)
    k1, k2, k3, k4, k5 = jax.random.split(key, 5)

    # calibration data (module __init__ inputs)
    M = 64                                # calibration set size
    num_bins = 16                         # -> 4 bins per dim, 5 edges, 16 total bins
    confidence1 = np.asarray(jax.random.uniform(k1, (M,), dtype=jnp.float32))
    confidence2 = np.asarray(jax.random.uniform(k2, (M,), dtype=jnp.float32))
    accuracy = np.asarray(
        (jax.random.uniform(k3, (M,), dtype=jnp.float32) > 0.5).astype(jnp.float32))

    model = BoxAccuracy(confidence1, confidence2, accuracy, num_bins)

    # forward inputs: (N, 2) confidence pairs; small case + a case that exercises
    # the multi-step grid and the in-kernel strip loop.
    for kk, N in ((k4, 8), (k5, 20000)):
        x = jax.random.uniform(kk, (N, 2), dtype=jnp.float32)
        out = jax.block_until_ready(model.forward(x))
        ref = model.forward_reference(np.asarray(x))
        assert out.shape == (N,)
        assert np.allclose(np.asarray(out), ref, atol=1e-6), (N, np.asarray(out), ref)

    print("KERNEL_OK")
</pallas_src>

<mosaic_0001>
module attributes {stable_mosaic.version = 11 : i64} {
  func.func @kernel(%arg0: i32, %arg1: memref<2x8x128xf32, #tpu.memory_space<vmem>>, %arg2: memref<8x128xf32, #tpu.memory_space<vmem>>) attributes {dimension_semantics = [#tpu.dimension_semantics<parallel>], iteration_bounds = array<i64: 1>, scalar_prefetch = 0 : i64, scratch_operands = 0 : i64, tpu.core_type = #tpu.core_type<tc>, window_params = [{transform_indices = @transform_0, window_bounds = array<i64: 2, 8, 128>}, {transform_indices = @transform_1, window_bounds = array<i64: 8, 128>}]} {
    %c0 = arith.constant 0 : index
    %c0_0 = arith.constant 0 : index
    %c0_1 = arith.constant 0 : index
    %0 = vector.load %arg1[%c0, %c0_0, %c0_1] : memref<2x8x128xf32, #tpu.memory_space<vmem>>, vector<1x8x128xf32>
    %1 = vector.shape_cast %0 : vector<1x8x128xf32> to vector<8x128xf32>
    %c1 = arith.constant 1 : index
    %c0_2 = arith.constant 0 : index
    %c0_3 = arith.constant 0 : index
    %2 = vector.load %arg1[%c1, %c0_2, %c0_3] : memref<2x8x128xf32, #tpu.memory_space<vmem>>, vector<1x8x128xf32>
    %3 = vector.shape_cast %2 : vector<1x8x128xf32> to vector<8x128xf32>
    %c0_i32 = arith.constant 0 : i32
    %4 = vector.broadcast %c0_i32 : i32 to vector<8x128xi32>
    %c0_i32_4 = arith.constant 0 : i32
    %5 = vector.broadcast %c0_i32_4 : i32 to vector<8x128xi32>
    %cst = arith.constant 0.250478417 : f32
    %6 = vector.broadcast %cst : f32 to vector<8x128xf32>
    %7 = arith.cmpf oge, %1, %6 : vector<8x128xf32>
    %8 = arith.extui %7 : vector<8x128xi1> to vector<8x128xi32>
    %9 = arith.addi %4, %8 : vector<8x128xi32>
    %cst_5 = arith.constant 2.513260e-01 : f32
    %10 = vector.broadcast %cst_5 : f32 to vector<8x128xf32>
    %11 = arith.cmpf oge, %3, %10 : vector<8x128xf32>
    %12 = arith.extui %11 : vector<8x128xi1> to vector<8x128xi32>
    %13 = arith.addi %5, %12 : vector<8x128xi32>
    %cst_6 = arith.constant 0.495019853 : f32
    %14 = vector.broadcast %cst_6 : f32 to vector<8x128xf32>
    %15 = arith.cmpf oge, %1, %14 : vector<8x128xf32>
    %16 = arith.extui %15 : vector<8x128xi1> to vector<8x128xi32>
    %17 = arith.addi %9, %16 : vector<8x128xi32>
    %cst_7 = arith.constant 0.495358169 : f32
    %18 = vector.broadcast %cst_7 : f32 to vector<8x128xf32>
    %19 = arith.cmpf oge, %3, %18 : vector<8x128xf32>
    %20 = arith.extui %19 : vector<8x128xi1> to vector<8x128xi32>
    %21 = arith.addi %13, %20 : vector<8x128xi32>
    %cst_8 = arith.constant 0.739561319 : f32
    %22 = vector.broadcast %cst_8 : f32 to vector<8x128xf32>
    %23 = arith.cmpf oge, %1, %22 : vector<8x128xf32>
    %24 = arith.extui %23 : vector<8x128xi1> to vector<8x128xi32>
    %25 = arith.addi %17, %24 : vector<8x128xi32>
    %cst_9 = arith.constant 0.739390373 : f32
    %26 = vector.broadcast %cst_9 : f32 to vector<8x128xf32>
    %27 = arith.cmpf oge, %3, %26 : vector<8x128xf32>
    %28 = arith.extui %27 : vector<8x128xi1> to vector<8x128xi32>
    %29 = arith.addi %21, %28 : vector<8x128xi32>
    %c4_i32 = arith.constant 4 : i32
    %30 = vector.broadcast %c4_i32 : i32 to vector<8x128xi32>
    %31 = arith.muli %25, %30 : vector<8x128xi32>
    %32 = arith.addi %31, %29 : vector<8x128xi32>
    %cst_10 = arith.constant 0.714285731 : f32
    %33 = vector.broadcast %cst_10 : f32 to vector<8x128xf32>
    %c1_i32 = arith.constant 1 : i32
    %34 = vector.broadcast %c1_i32 : i32 to vector<8x128xi32>
    %35 = arith.cmpi eq, %32, %34 : vector<8x128xi32>
    %cst_11 = arith.constant 4.000000e-01 : f32
    %36 = vector.broadcast %cst_11 : f32 to vector<8x128xf32>
    %37 = arith.select %35, %36, %33 : vector<8x128xi1>, vector<8x128xf32>
    %c2_i32 = arith.constant 2 : i32
    %38 = vector.broadcast %c2_i32 : i32 to vector<8x128xi32>
    %39 = arith.cmpi eq, %32, %38 : vector<8x128xi32>
    %cst_12 = arith.constant 0.000000e+00 : f32
    %40 = vector.broadcast %cst_12 : f32 to vector<8x128xf32>
    %41 = arith.select %39, %40, %37 : vector<8x128xi1>, vector<8x128xf32>
    %c3_i32 = arith.constant 3 : i32
    %42 = vector.broadcast %c3_i32 : i32 to vector<8x128xi32>
    %43 = arith.cmpi eq, %32, %42 : vector<8x128xi32>
    %cst_13 = arith.constant 0.000000e+00 : f32
    %44 = vector.broadcast %cst_13 : f32 to vector<8x128xf32>
    %45 = arith.select %43, %44, %41 : vector<8x128xi1>, vector<8x128xf32>
    %c4_i32_14 = arith.constant 4 : i32
    %46 = vector.broadcast %c4_i32_14 : i32 to vector<8x128xi32>
    %47 = arith.cmpi eq, %32, %46 : vector<8x128xi32>
    %cst_15 = arith.constant 0.666666686 : f32
    %48 = vector.broadcast %cst_15 : f32 to vector<8x128xf32>
    %49 = arith.select %47, %48, %45 : vector<8x128xi1>, vector<8x128xf32>
    %c5_i32 = arith.constant 5 : i32
    %50 = vector.broadcast %c5_i32 : i32 to vector<8x128xi32>
    %51 = arith.cmpi eq, %32, %50 : vector<8x128xi32>
    %cst_16 = arith.constant 0.333333343 : f32
    %52 = vector.broadcast %cst_16 : f32 to vector<8x128xf32>
    %53 = arith.select %51, %52, %49 : vector<8x128xi1>, vector<8x128xf32>
    %c6_i32 = arith.constant 6 : i32
    %54 = vector.broadcast %c6_i32 : i32 to vector<8x128xi32>
    %55 = arith.cmpi eq, %32, %54 : vector<8x128xi32>
    %cst_17 = arith.constant 5.000000e-01 : f32
    %56 = vector.broadcast %cst_17 : f32 to vector<8x128xf32>
    %57 = arith.select %55, %56, %53 : vector<8x128xi1>, vector<8x128xf32>
    %c7_i32 = arith.constant 7 : i32
    %58 = vector.broadcast %c7_i32 : i32 to vector<8x128xi32>
    %59 = arith.cmpi eq, %32, %58 : vector<8x128xi32>
    %cst_18 = arith.constant 1.000000e+00 : f32
    %60 = vector.broadcast %cst_18 : f32 to vector<8x128xf32>
    %61 = arith.select %59, %60, %57 : vector<8x128xi1>, vector<8x128xf32>
    %c8_i32 = arith.constant 8 : i32
    %62 = vector.broadcast %c8_i32 : i32 to vector<8x128xi32>
    %63 = arith.cmpi eq, %32, %62 : vector<8x128xi32>
    %cst_19 = arith.constant 4.000000e-01 : f32
    %64 = vector.broadcast %cst_19 : f32 to vector<8x128xf32>
    %65 = arith.select %63, %64, %61 : vector<8x128xi1>, vector<8x128xf32>
    %c9_i32 = arith.constant 9 : i32
    %66 = vector.broadcast %c9_i32 : i32 to vector<8x128xi32>
    %67 = arith.cmpi eq, %32, %66 : vector<8x128xi32>
    %cst_20 = arith.constant 5.000000e-01 : f32
    %68 = vector.broadcast %cst_20 : f32 to vector<8x128xf32>
    %69 = arith.select %67, %68, %65 : vector<8x128xi1>, vector<8x128xf32>
    %c10_i32 = arith.constant 10 : i32
    %70 = vector.broadcast %c10_i32 : i32 to vector<8x128xi32>
    %71 = arith.cmpi eq, %32, %70 : vector<8x128xi32>
    %cst_21 = arith.constant 0.666666686 : f32
    %72 = vector.broadcast %cst_21 : f32 to vector<8x128xf32>
    %73 = arith.select %71, %72, %69 : vector<8x128xi1>, vector<8x128xf32>
    %c11_i32 = arith.constant 11 : i32
    %74 = vector.broadcast %c11_i32 : i32 to vector<8x128xi32>
    %75 = arith.cmpi eq, %32, %74 : vector<8x128xi32>
    %cst_22 = arith.constant 1.000000e+00 : f32
    %76 = vector.broadcast %cst_22 : f32 to vector<8x128xf32>
    %77 = arith.select %75, %76, %73 : vector<8x128xi1>, vector<8x128xf32>
    %c12_i32 = arith.constant 12 : i32
    %78 = vector.broadcast %c12_i32 : i32 to vector<8x128xi32>
    %79 = arith.cmpi eq, %32, %78 : vector<8x128xi32>
    %cst_23 = arith.constant 7.500000e-01 : f32
    %80 = vector.broadcast %cst_23 : f32 to vector<8x128xf32>
    %81 = arith.select %79, %80, %77 : vector<8x128xi1>, vector<8x128xf32>
    %c13_i32 = arith.constant 13 : i32
    %82 = vector.broadcast %c13_i32 : i32 to vector<8x128xi32>
    %83 = arith.cmpi eq, %32, %82 : vector<8x128xi32>
    %cst_24 = arith.constant 2.500000e-01 : f32
    %84 = vector.broadcast %cst_24 : f32 to vector<8x128xf32>
    %85 = arith.select %83, %84, %81 : vector<8x128xi1>, vector<8x128xf32>
    %c14_i32 = arith.constant 14 : i32
    %86 = vector.broadcast %c14_i32 : i32 to vector<8x128xi32>
    %87 = arith.cmpi eq, %32, %86 : vector<8x128xi32>
    %cst_25 = arith.constant 0.000000e+00 : f32
    %88 = vector.broadcast %cst_25 : f32 to vector<8x128xf32>
    %89 = arith.select %87, %88, %85 : vector<8x128xi1>, vector<8x128xf32>
    %c15_i32 = arith.constant 15 : i32
    %90 = vector.broadcast %c15_i32 : i32 to vector<8x128xi32>
    %91 = arith.cmpi eq, %32, %90 : vector<8x128xi32>
    %cst_26 = arith.constant 0.428571433 : f32
    %92 = vector.broadcast %cst_26 : f32 to vector<8x128xf32>
    %93 = arith.select %91, %92, %89 : vector<8x128xi1>, vector<8x128xf32>
    %c0_27 = arith.constant 0 : index
    %c0_28 = arith.constant 0 : index
    %94 = vector.load %arg2[%c0_27, %c0_28] : memref<8x128xf32, #tpu.memory_space<vmem>>, vector<8x128xf32>
    tpu.vector_store %arg2[%c0_27, %c0_28], %93 {strides = array<i32>} : memref<8x128xf32, #tpu.memory_space<vmem>>, vector<8x128xf32>,
    return
  }
  func.func @transform_0(%arg0: i32) -> (i32, i32, i32) {
    %c0_i32 = arith.constant 0 : i32
    %c0_i32_0 = arith.constant 0 : i32
    %c0_i32_1 = arith.constant 0 : i32
    return %c0_i32, %arg0, %c0_i32_0 : i32, i32, i32
  }
  func.func @transform_1(%arg0: i32) -> (i32, i32) {
    %c0_i32 = arith.constant 0 : i32
    %c0_i32_0 = arith.constant 0 : i32
    return %arg0, %c0_i32 : i32, i32
  }
}

</mosaic_0001>

<bundles_post_ra>
// kernel: tpu_custom_call.1
= control target key start
LH: loop header
LB: loop body
LE: loop exit
PB: predicated region body
PF: predicated region fallthrough
CT: control target
= control target key end

     0   :  { %6 = vsyncpa [#allocation3], 0  ;;  %s184_s0 = inlined_call_operand.hbm [shape: f32[2,8,128], index: 0, kind: input, shape index: {}]   ;;  %s185_s1 = inlined_call_operand.hbm [shape: f32[8,128], index: 1, kind: output, shape index: {}]  }
   0x1   :  { %7 = vsyncpa [#allocation4], 0  ;;  %s144_s6 = smov [#allocation2]   ;;  %s96_s10 = scalar_lea.hbm %s184_s0, 256 }
   0x2   :  { %s13_s7 = sshll.u32 %s144_s6, 4  ;;  %p97_p0 = scmp.ne.s32.totalorder %s184_s0, %s96_s10  ;;  %s14_s7 = int_to_ptr.vmem [resolvable:$true] %s13_s7 }
   0x3   :  { %p100_p1 = scmp.lt.u32.totalorder %s96_s10, %s184_s0 }
   0x5   :  { %p102_p2 = pnand %p100_p1, %p97_p0 }
   0x7   :  { %105 = shalt.err (!%p102_p2)
}
   0x8   :  { %s106_s15 = scalar_lea.vmem %s14_s7, 256  ;;  %p111_p4 = scmp.lt.s32.totalorder %s14_s7, %s14_s7 }
   0x9   :  { %p107_p3 = scmp.ne.s32.totalorder %s14_s7, %s106_s15  ;;  %p112_p5 = scmp.lt.s32.totalorder %s106_s15, %s106_s15 }
   0xb   :  { %p113_p6 = por %p112_p5, %p111_p4 }
   0xd   :  { %p114_p7 = pnand %p113_p6, %p107_p3 }
   0xf   :  { %117 = shalt.err (!%p114_p7)
}
  0x10   :  { %s145_s16 = smov 128   ;;  %s146_s17 = smov 8  }
  0x11   :  { %19 = dma.hbm_to_vmem [thread:$0]  %s184_s0, 256, %s14_s7, [#allocation3], %s145_s16, %s145_s16, %s146_s17  }
  0x12   :  { %140 = dma.done.wait [#allocation3], 256  }
  0x13   :  { %141 = vsyncadd [#allocation3], 4294967040  ;;  %v23_v0 = vld [vmem:[#allocation2] sm:$0xff]  ;;  %v25_v1 = vld [vmem:[#allocation2 + $0x8] sm:$0xff]  ;;  %v147_v2 = vmov 0   ;;  %s149_s0 = smov [#allocation5]  }
  0x14   :  { %vm26_vm0 = vcmp.ge.f32.partialorder %v23_v0, 0.25047842  ;;  %vm28_vm1 = vcmp.ge.f32.partialorder %v25_v1, 0.251326  ;;  %vm30_vm2 = vcmp.ge.f32.partialorder %v23_v0, 0.49501985 }
  0x15   :  { %v27_v3 = vsel %vm26_vm0, 1, %v147_v2  ;;  %v29_v4 = vsel %vm28_vm1, 1, %v147_v2  ;;  %v31_v5 = vsel %vm30_vm2, 1, %v147_v2  ;;  %vm33_vm3 = vcmp.ge.f32.partialorder %v25_v1, 0.49535817  ;;  %s81_s20 = sshll.u32 %s149_s0, 4  ;;  %s82_s20 = int_to_ptr.vmem [resolvable:$true] %s81_s20 }
  0x16   :  { %v32_v6 = vadd.s32 %v31_v5, %v27_v3  ;;  %v34_v7 = vsel %vm33_vm3, 1, %v147_v2  ;;  %vm36_vm4 = vcmp.ge.f32.partialorder %v23_v0, 0.7395613  ;;  %vm39_vm5 = vcmp.ge.f32.partialorder %v25_v1, 0.7393904  ;;  %s118_s21 = scalar_lea.vmem %s82_s20, 128  ;;  %p123_p9 = scmp.lt.s32.totalorder %s82_s20, %s82_s20 }
  0x17   :  { %v35_v8 = vadd.s32 %v34_v7, %v29_v4  ;;  %v37_v9 = vsel %vm36_vm4, 1, %v147_v2  ;;  %v40_v10 = vsel %vm39_vm5, 1, %v147_v2  ;;  %v148_v15 = vmov 0.71428573   ;;  %p119_p8 = scmp.ne.s32.totalorder %s82_s20, %s118_s21  ;;  %p124_p10 = scmp.lt.s32.totalorder %s118_s21, %s118_s21 }
  0x18   :  { %v38_v11 = vadd.s32 %v37_v9, %v32_v6 }
  0x19   :  { %v41_v12 = vadd.s32 %v40_v10, %v35_v8  ;;  %p125_p11 = por %p124_p10, %p123_p9 }
  0x1a   :  { %v42_v13 = vmul.u32 4, %v38_v11 }
  0x1b   :  { %p126_p12 = pnand %p125_p11, %p119_p8 }
  0x1c   :  { %v43_v14 = vadd.s32 %v42_v13, %v41_v12 }
  0x1e   :  { %vm44_vm6 = vcmp.eq.s32.totalorder %v43_v14, 1  ;;  %vm46_vm7 = vcmp.eq.s32.totalorder %v43_v14, 2  ;;  %vm48_vm8 = vcmp.eq.s32.totalorder %v43_v14, 3  ;;  %vm50_vm9 = vcmp.eq.s32.totalorder %v43_v14, 4 }
  0x1f   :  { %v45_v16 = vsel %vm44_vm6, 0.4, %v148_v15  ;;  %vm52_vm10 = vcmp.eq.s32.totalorder %v43_v14, 5  ;;  %vm54_vm11 = vcmp.eq.s32.totalorder %v43_v14, 6  ;;  %vm56_vm12 = vcmp.eq.s32.totalorder %v43_v14, 7 }
  0x20   :  { %v47_v17 = vsel %vm46_vm7, 0.0, %v45_v16  ;;  %vm58_vm13 = vcmp.eq.s32.totalorder %v43_v14, 8  ;;  %vm60_vm14 = vcmp.eq.s32.totalorder %v43_v14, 9  ;;  %vm62_vm15 = vcmp.eq.s32.totalorder %v43_v14, 10 }
  0x21   :  { %v49_v18 = vsel %vm48_vm8, 0.0, %v47_v17  ;;  %vm64_vm0 = vcmp.eq.s32.totalorder %v43_v14, 11  ;;  %vm66_vm1 = vcmp.eq.s32.totalorder %v43_v14, 12  ;;  %vm68_vm2 = vcmp.eq.s32.totalorder %v43_v14, 13 }
  0x22   :  { %v51_v19 = vsel %vm50_vm9, 0.6666667, %v49_v18  ;;  %vm70_vm3 = vcmp.eq.s32.totalorder %v43_v14, 14  ;;  %vm72_vm4 = vcmp.eq.s32.totalorder %v43_v14, 15 }
  0x23   :  { %v53_v20 = vsel %vm52_vm10, 0.33333334, %v51_v19 }
  0x24   :  { %v55_v21 = vsel %vm54_vm11, 0.5, %v53_v20 }
  0x25   :  { %v57_v22 = vsel %vm56_vm12, 1.0, %v55_v21 }
  0x26   :  { %v59_v23 = vsel %vm58_vm13, 0.4, %v57_v22 }
  0x27   :  { %v61_v24 = vsel %vm60_vm14, 0.5, %v59_v23 }
  0x28   :  { %v63_v25 = vsel %vm62_vm15, 0.6666667, %v61_v24 }
  0x29   :  { %v65_v26 = vsel %vm64_vm0, 1.0, %v63_v25 }
  0x2a   :  { %v67_v27 = vsel %vm66_vm1, 0.75, %v65_v26 }
  0x2b   :  { %v69_v28 = vsel %vm68_vm2, 0.25, %v67_v27 }
  0x2c   :  { %v71_v29 = vsel %vm70_vm3, 0.0, %v69_v28 }
  0x2d   :  { %v73_v30 = vsel %vm72_vm4, 0.42857143, %v71_v29 }
  0x2e   :  { %74 = vst [vmem:[#allocation5] sm:$0xff] %v73_v30 }
  0x2f   :  { %129 = shalt.err (!%p126_p12)
}
  0x30   :  { %s130_s24 = scalar_lea.hbm %s185_s1, 128 }
  0x31   :  { %p131_p13 = scmp.ne.s32.totalorder %s185_s1, %s130_s24  ;;  %p134_p0 = scmp.lt.u32.totalorder %s130_s24, %s185_s1 }
  0x33   :  { %p136_p1 = pnand %p134_p0, %p131_p13 }
  0x35   :  { %139 = shalt.err (!%p136_p1)
}
  0x36   :  { %84 = dma.vmem_to_hbm [thread:$0]  %s82_s20, 128, %s185_s1, [#allocation4]  }
  0x37   :  { %142 = dma.done.wait [#allocation4], 128  }
  0x38   :  { %143 = vsyncadd [#allocation4], 4294967168 }
  0x39   :  { %88 = vsyncpa [#allocation3], 1 }
  0x3a   :  { %89 = vsyncpa [#allocation4], 1 }

</bundles_post_ra>
